<compile_context>
chip_gen: v5e
topology: v5e:2x2
jax: 0.10.0
libtpu: 0.0.40
codegen_flags: <defaults>
</compile_context>

<pallas_src>
import jax
import jax.numpy as jnp
from jax.experimental import pallas as pl
from jax.experimental.pallas import tpu as pltpu


def atloc_kernel(x_ref,        # (tile_n, C*HW)  streamed activation tile
                 wfe_ref,      # (C*HW, D)       pool+fc fused weight (scale folded)
                 bfe_ref,      # (1, D)
                 wg_ref,       # (D, D/8)        AttentionBlock.g
                 bg_ref,       # (1, D/8)
                 ww_ref,       # (D/8, D)        AttentionBlock.W
                 bw_ref,       # (1, D)
                 whead_ref,    # (D, 6)          [fc_xyz | fc_wpqr] fused
                 bhead_ref,    # (1, 6)
                 out_ref):     # (tile_n, 6)
    """One tile of rows: fused pool+fc -> relu -> attention -> pose head."""
    x = x_ref[...].astype(jnp.float32)                       # (tile_n, C*HW)

    # Global-average-pool + Linear fused into a single K=C*HW MXU matmul.
    feat = jnp.dot(x, wfe_ref[...],
                   preferred_element_type=jnp.float32) + bfe_ref[...]
    feat = jnp.maximum(feat, 0.0)                             # ReLU, (tile_n, D)

    # AttentionBlock: f = phi^T theta is a scalar per sample and the softmax is
    # over that size-1 axis, hence identically 1 => y == g (bit-exact).  The
    # theta/phi branch is therefore dead compute and is omitted.
    g = jnp.dot(feat, wg_ref[...],
                preferred_element_type=jnp.float32) + bg_ref[...]   # (tile_n, D/8)
    z = jnp.dot(g, ww_ref[...],
                preferred_element_type=jnp.float32) + bw_ref[...] + feat  # residual

    # Fused pose regressor head: [xyz | wpqr] in one matmul, direct store.
    out_ref[...] = (jnp.dot(z, whead_ref[...],
                            preferred_element_type=jnp.float32)
                    + bhead_ref[...]).astype(out_ref.dtype)


def _choose_tile_n(N, bytes_per_row, *, target_steps=4, x_budget_bytes=8 << 20):
    """Pick tile_n: a multiple-of-8 divisor of N whose double-buffered x tile
    fits `x_budget_bytes`, preferring >= target_steps grid steps, else the
    largest valid tile.  Falls back to the full array for tiny N."""
    max_rows = max(8, (x_budget_bytes // 2) // max(bytes_per_row, 1))
    candidates = [t for t in range(8, N + 1, 8) if N % t == 0 and t <= max_rows]
    if not candidates:
        return N  # N < 8 or no multiple-of-8 divisor: single full-array tile
    deep = [t for t in candidates if N // t >= target_steps]
    return max(deep) if deep else max(candidates)


def atlocplus_forward(x, params, *, tile_n=None, stream_bf16=False):
    """x: (B, T, C, H, W) float32 -> poses (B, T, 6)."""
    B, T, C, H, W = x.shape
    N = B * T
    HW = H * W
    K = C * HW

    (wfe, bfe, wg, bg, _wt, _bt, _wp, _bp, ww, bw,
     wxyz, bxyz, wwpqr, bwpqr) = params
    D = wfe.shape[1]
    D8 = wg.shape[1]

    # --- wrapper-side parameter fusion ---------------------------------------
    # Fold the 1/HW mean into the feature-extractor weight and expand it over
    # the flattened (c, hw) axis so pool+fc becomes one matmul with K = C*HW.
    w_eff = jnp.repeat(wfe, HW, axis=0) / jnp.float32(HW)     # (C*HW, D)
    # Fuse the xyz / wpqr heads into one (D, 6) weight + (1, 6) bias.
    w_head = jnp.concatenate([wxyz, wwpqr], axis=1)           # (D, 6)
    b_head = jnp.concatenate([bxyz, bwpqr], axis=1)           # (1, 6)

    # --- activation layout ----------------------------------------------------
    # Flatten to 2-D: sublane axis = rows (fully packed), lane axis = C*HW.
    x_dtype = jnp.bfloat16 if stream_bf16 else jnp.float32
    x_flat = x.reshape(N, K).astype(x_dtype)

    # --- tiling ---------------------------------------------------------------
    if tile_n is None:
        tile_n = _choose_tile_n(N, K * x_flat.dtype.itemsize)
    assert N % tile_n == 0, "tile_n must divide N"
    assert tile_n == N or tile_n % 8 == 0, \
        "tile_n must be a multiple of 8 (f32 sublane tiling) when tiling N"
    grid = (N // tile_n,)

    def full_spec(shape):
        # whole-array block, identical for every grid step (stays resident)
        return pl.BlockSpec(shape, lambda i: tuple(0 for _ in shape))

    in_specs = [
        pl.BlockSpec((tile_n, K), lambda i: (i, 0)),          # x tile (streamed)
        full_spec((K, D)), full_spec((1, D)),                 # fused pool+fc
        full_spec((D, D8)), full_spec((1, D8)),               # g
        full_spec((D8, D)), full_spec((1, D)),                # W
        full_spec((D, 6)), full_spec((1, 6)),                 # fused pose head
    ]
    out_spec = pl.BlockSpec((tile_n, 6), lambda i: (i, 0))

    poses = pl.pallas_call(
        atloc_kernel,
        out_shape=jax.ShapeDtypeStruct((N, 6), jnp.float32),
        grid_spec=pl.GridSpec(
            grid=grid,
            in_specs=in_specs,
            out_specs=out_spec,
        ),
        # "parallel": independent row tiles -> megacore sharding on v7x.
        # For much larger tiles than the default budget, also set
        # vmem_limit_bytes per generation (<=48 MiB on v7x, <=96 MiB on v6e).
        compiler_params=pltpu.CompilerParams(
            dimension_semantics=("parallel",)),
    )(x_flat, w_eff, bfe, wg, bg, ww, bw, w_head, b_head)

    return poses.reshape(B, T, 6)


def init_params(key, C, D):
    """Deterministic parameter init mirroring the PyTorch module.  nn.Linear
    stores weight as (out, in) and computes x @ W.T + b; we materialize
    (in, out) matrices (i.e. W.T) so matmuls are plain row-major."""
    D8 = D // 8
    keys = jax.random.split(key, 14)

    def lin(kw, kb, fan_in, fan_out):
        bound = 1.0 / jnp.sqrt(jnp.float32(fan_in))
        w = jax.random.uniform(kw, (fan_in, fan_out), jnp.float32, -bound, bound)
        b = jax.random.uniform(kb, (1, fan_out), jnp.float32, -bound, bound)
        return w, b

    wfe, bfe = lin(keys[0], keys[1], C, D)        # feature-extractor fc
    wg, bg = lin(keys[2], keys[3], D, D8)         # AttentionBlock.g
    wt, bt = lin(keys[4], keys[5], D, D8)         # AttentionBlock.theta
    wp, bp = lin(keys[6], keys[7], D, D8)         # AttentionBlock.phi
    ww, bw = lin(keys[8], keys[9], D8, D)         # AttentionBlock.W
    wxyz, bxyz = lin(keys[10], keys[11], D, 3)    # fc_xyz
    wwpqr, bwpqr = lin(keys[12], keys[13], D, 3)  # fc_wpqr
    return (wfe, bfe, wg, bg, wt, bt, wp, bp, ww, bw, wxyz, bxyz, wwpqr, bwpqr)


def reference_forward(x, params):
    """Pure-JAX reference of the full module forward (incl. the theta/phi
    branch and singleton softmax) for the correctness check."""
    (wfe, bfe, wg, bg, wt, bt, wp, bp, ww, bw,
     wxyz, bxyz, wwpqr, bwpqr) = params
    B, T, C, H, W = x.shape
    xf = x.reshape(B * T, C, H * W)
    pooled = jnp.mean(xf, axis=-1)
    feat = jax.nn.relu(pooled @ wfe + bfe)
    g = feat @ wg + bg
    theta = feat @ wt + bt
    phi = feat @ wp + bp
    f = jnp.sum(phi * theta, axis=-1, keepdims=True)
    y = jax.nn.softmax(f[:, None, :], axis=-1)[:, 0, :] * g   # == g exactly
    z = (y @ ww + bw) + feat
    poses = jnp.concatenate([z @ wxyz + bxyz, z @ wwpqr + bwpqr], axis=-1)
    return poses.reshape(B, T, 6)


if __name__ == "__main__":
    # Small deterministic problem: N = B*T = 32 rows -> tile_n = 8, grid = 4
    # steps (double-buffered x stream, megacore-shardable on v7x).
    B, T, C, H, W = 2, 16, 4, 16, 16
    D = 32  # feat_dim (must be divisible by 8)

    key = jax.random.PRNGKey(0)
    kx, kp = jax.random.split(key)
    x = jax.random.normal(kx, (B, T, C, H, W), dtype=jnp.float32)
    params = init_params(kp, C, D)

    run = jax.jit(atlocplus_forward)
    poses = run(x, params)
    jax.block_until_ready(poses)

    ref = reference_forward(x, params)
    assert poses.shape == (B, T, 6)
    assert jnp.allclose(poses, ref, atol=1e-4, rtol=1e-4), "mismatch vs reference"
    print("KERNEL_OK")
</pallas_src>

<mosaic_0001>
module attributes {stable_mosaic.version = 11 : i64} {
  func.func @atloc_kernel(%arg0: i32, %arg1: memref<8x1024xf32, #tpu.memory_space<vmem>>, %arg2: memref<1024x32xf32, #tpu.memory_space<vmem>>, %arg3: memref<1x32xf32, #tpu.memory_space<vmem>>, %arg4: memref<32x4xf32, #tpu.memory_space<vmem>>, %arg5: memref<1x4xf32, #tpu.memory_space<vmem>>, %arg6: memref<4x32xf32, #tpu.memory_space<vmem>>, %arg7: memref<1x32xf32, #tpu.memory_space<vmem>>, %arg8: memref<32x6xf32, #tpu.memory_space<vmem>>, %arg9: memref<1x6xf32, #tpu.memory_space<vmem>>, %arg10: memref<8x6xf32, #tpu.memory_space<vmem>>) attributes {dimension_semantics = [#tpu.dimension_semantics<parallel>], iteration_bounds = array<i64: 4>, scalar_prefetch = 0 : i64, scratch_operands = 0 : i64, tpu.core_type = #tpu.core_type<tc>, window_params = [{transform_indices = @transform_0, window_bounds = array<i64: 8, 1024>}, {pipeline_mode = #tpu.pipeline_mode<synchronous>, transform_indices = @transform_1, window_bounds = array<i64: 1024, 32>}, {pipeline_mode = #tpu.pipeline_mode<synchronous>, transform_indices = @transform_2, window_bounds = array<i64: 1, 32>}, {pipeline_mode = #tpu.pipeline_mode<synchronous>, transform_indices = @transform_3, window_bounds = array<i64: 32, 4>}, {pipeline_mode = #tpu.pipeline_mode<synchronous>, transform_indices = @transform_4, window_bounds = array<i64: 1, 4>}, {pipeline_mode = #tpu.pipeline_mode<synchronous>, transform_indices = @transform_5, window_bounds = array<i64: 4, 32>}, {pipeline_mode = #tpu.pipeline_mode<synchronous>, transform_indices = @transform_6, window_bounds = array<i64: 1, 32>}, {pipeline_mode = #tpu.pipeline_mode<synchronous>, transform_indices = @transform_7, window_bounds = array<i64: 32, 6>}, {pipeline_mode = #tpu.pipeline_mode<synchronous>, transform_indices = @transform_8, window_bounds = array<i64: 1, 6>}, {transform_indices = @transform_9, window_bounds = array<i64: 8, 6>}]} {
    %c0 = arith.constant 0 : index
    %c0_0 = arith.constant 0 : index
    %0 = vector.load %arg1[%c0, %c0_0] : memref<8x1024xf32, #tpu.memory_space<vmem>>, vector<8x1024xf32>
    %c0_1 = arith.constant 0 : index
    %c0_2 = arith.constant 0 : index
    %1 = vector.load %arg2[%c0_1, %c0_2] : memref<1024x32xf32, #tpu.memory_space<vmem>>, vector<1024x32xf32>
    %cst = arith.constant dense<0.000000e+00> : vector<8x32xf32>
    %2 = tpu.matmul %0, %1, %cst {dimension_numbers = #tpu.dot_dimension_numbers<[1], [0], [0], [1], [0, 0, 1, 1], [], []>} : vector<8x1024xf32>, vector<1024x32xf32>, vector<8x32xf32> -> vector<8x32xf32>
    %c0_3 = arith.constant 0 : index
    %c0_4 = arith.constant 0 : index
    %3 = vector.load %arg3[%c0_3, %c0_4] : memref<1x32xf32, #tpu.memory_space<vmem>>, vector<1x32xf32>
    %4 = vector.broadcast %3 : vector<1x32xf32> to vector<8x32xf32>
    %5 = arith.addf %2, %4 : vector<8x32xf32>
    %cst_5 = arith.constant 0.000000e+00 : f32
    %6 = vector.broadcast %cst_5 : f32 to vector<8x32xf32>
    %7 = arith.maximumf %5, %6 : vector<8x32xf32>
    %c0_6 = arith.constant 0 : index
    %c0_7 = arith.constant 0 : index
    %8 = vector.load %arg4[%c0_6, %c0_7] : memref<32x4xf32, #tpu.memory_space<vmem>>, vector<32x4xf32>
    %cst_8 = arith.constant dense<0.000000e+00> : vector<8x4xf32>
    %9 = tpu.matmul %7, %8, %cst_8 {dimension_numbers = #tpu.dot_dimension_numbers<[1], [0], [0], [1], [0, 0, 1, 1], [], []>} : vector<8x32xf32>, vector<32x4xf32>, vector<8x4xf32> -> vector<8x4xf32>
    %c0_9 = arith.constant 0 : index
    %c0_10 = arith.constant 0 : index
    %10 = vector.load %arg5[%c0_9, %c0_10] : memref<1x4xf32, #tpu.memory_space<vmem>>, vector<1x4xf32>
    %11 = vector.broadcast %10 : vector<1x4xf32> to vector<8x4xf32>
    %12 = arith.addf %9, %11 : vector<8x4xf32>
    %c0_11 = arith.constant 0 : index
    %c0_12 = arith.constant 0 : index
    %13 = vector.load %arg6[%c0_11, %c0_12] : memref<4x32xf32, #tpu.memory_space<vmem>>, vector<4x32xf32>
    %cst_13 = arith.constant dense<0.000000e+00> : vector<8x32xf32>
    %14 = tpu.matmul %12, %13, %cst_13 {dimension_numbers = #tpu.dot_dimension_numbers<[1], [0], [0], [1], [0, 0, 1, 1], [], []>} : vector<8x4xf32>, vector<4x32xf32>, vector<8x32xf32> -> vector<8x32xf32>
    %c0_14 = arith.constant 0 : index
    %c0_15 = arith.constant 0 : index
    %15 = vector.load %arg7[%c0_14, %c0_15] : memref<1x32xf32, #tpu.memory_space<vmem>>, vector<1x32xf32>
    %16 = vector.broadcast %15 : vector<1x32xf32> to vector<8x32xf32>
    %17 = arith.addf %14, %16 : vector<8x32xf32>
    %18 = arith.addf %17, %7 : vector<8x32xf32>
    %c0_16 = arith.constant 0 : index
    %c0_17 = arith.constant 0 : index
    %19 = vector.load %arg8[%c0_16, %c0_17] : memref<32x6xf32, #tpu.memory_space<vmem>>, vector<32x6xf32>
    %cst_18 = arith.constant dense<0.000000e+00> : vector<8x6xf32>
    %20 = tpu.matmul %18, %19, %cst_18 {dimension_numbers = #tpu.dot_dimension_numbers<[1], [0], [0], [1], [0, 0, 1, 1], [], []>} : vector<8x32xf32>, vector<32x6xf32>, vector<8x6xf32> -> vector<8x6xf32>
    %c0_19 = arith.constant 0 : index
    %c0_20 = arith.constant 0 : index
    %21 = vector.load %arg9[%c0_19, %c0_20] : memref<1x6xf32, #tpu.memory_space<vmem>>, vector<1x6xf32>
    %22 = vector.broadcast %21 : vector<1x6xf32> to vector<8x6xf32>
    %23 = arith.addf %20, %22 : vector<8x6xf32>
    %c0_21 = arith.constant 0 : index
    %c0_22 = arith.constant 0 : index
    %24 = vector.load %arg10[%c0_21, %c0_22] : memref<8x6xf32, #tpu.memory_space<vmem>>, vector<8x6xf32>
    tpu.vector_store %arg10[%c0_21, %c0_22], %23 {strides = array<i32>} : memref<8x6xf32, #tpu.memory_space<vmem>>, vector<8x6xf32>,
    return
  }
  func.func @transform_0(%arg0: i32) -> (i32, i32) {
    %c0_i32 = arith.constant 0 : i32
    %c0_i32_0 = arith.constant 0 : i32
    return %arg0, %c0_i32 : i32, i32
  }
  func.func @transform_1(%arg0: i32) -> (i32, i32) {
    %c0_i32 = arith.constant 0 : i32
    %c0_i32_0 = arith.constant 0 : i32
    %c0_i32_1 = arith.constant 0 : i32
    return %c0_i32, %c0_i32_0 : i32, i32
  }
  func.func @transform_2(%arg0: i32) -> (i32, i32) {
    %c0_i32 = arith.constant 0 : i32
    %c0_i32_0 = arith.constant 0 : i32
    %c0_i32_1 = arith.constant 0 : i32
    return %c0_i32, %c0_i32_0 : i32, i32
  }
  func.func @transform_3(%arg0: i32) -> (i32, i32) {
    %c0_i32 = arith.constant 0 : i32
    %c0_i32_0 = arith.constant 0 : i32
    %c0_i32_1 = arith.constant 0 : i32
    return %c0_i32, %c0_i32_0 : i32, i32
  }
  func.func @transform_4(%arg0: i32) -> (i32, i32) {
    %c0_i32 = arith.constant 0 : i32
    %c0_i32_0 = arith.constant 0 : i32
    %c0_i32_1 = arith.constant 0 : i32
    return %c0_i32, %c0_i32_0 : i32, i32
  }
  func.func @transform_5(%arg0: i32) -> (i32, i32) {
    %c0_i32 = arith.constant 0 : i32
    %c0_i32_0 = arith.constant 0 : i32
    %c0_i32_1 = arith.constant 0 : i32
    return %c0_i32, %c0_i32_0 : i32, i32
  }
  func.func @transform_6(%arg0: i32) -> (i32, i32) {
    %c0_i32 = arith.constant 0 : i32
    %c0_i32_0 = arith.constant 0 : i32
    %c0_i32_1 = arith.constant 0 : i32
    return %c0_i32, %c0_i32_0 : i32, i32
  }
  func.func @transform_7(%arg0: i32) -> (i32, i32) {
    %c0_i32 = arith.constant 0 : i32
    %c0_i32_0 = arith.constant 0 : i32
    %c0_i32_1 = arith.constant 0 : i32
    return %c0_i32, %c0_i32_0 : i32, i32
  }
  func.func @transform_8(%arg0: i32) -> (i32, i32) {
    %c0_i32 = arith.constant 0 : i32
    %c0_i32_0 = arith.constant 0 : i32
    %c0_i32_1 = arith.constant 0 : i32
    return %c0_i32, %c0_i32_0 : i32, i32
  }
  func.func @transform_9(%arg0: i32) -> (i32, i32) {
    %c0_i32 = arith.constant 0 : i32
    %c0_i32_0 = arith.constant 0 : i32
    return %arg0, %c0_i32 : i32, i32
  }
}

</mosaic_0001>

<bundles_post_ra>
// kernel: atlocplus_forward.1
= control target key start
LH: loop header
LB: loop body
LE: loop exit
PB: predicated region body
PF: predicated region fallthrough
CT: control target
= control target key end

     0   :  { %s869_s30 = smov 0   ;;  %s1335_s0 = inlined_call_operand.vmem [shape: f32[32,1024], index: 0, kind: input, shape index: {}]   ;;  %s1336_s1 = inlined_call_operand.vmem [shape: f32[1024,32], index: 1, kind: input, shape index: {}]   ;;  %s1337_s2 = inlined_call_operand.vmem [shape: f32[1,32], index: 2, kind: input, shape index: {}]   ;;  %s1338_s3 = inlined_call_operand.vmem [shape: f32[32,4], index: 3, kind: input, shape index: {}]   ;;  %s1339_s4 = inlined_call_operand.vmem [shape: f32[1,4], index: 4, kind: input, shape index: {}]   ;;  %s1340_s5 = inlined_call_operand.vmem [shape: f32[4,32], index: 5, kind: input, shape index: {}]   ;;  %s1341_s6 = inlined_call_operand.vmem [shape: f32[1,32], index: 6, kind: input, shape index: {}]   ;;  %s1342_s7 = inlined_call_operand.vmem [shape: f32[32,6], index: 7, kind: input, shape index: {}]   ;;  %s1343_s8 = inlined_call_operand.vmem [shape: f32[1,6], index: 8, kind: input, shape index: {}]   ;;  %s1344_s9 = inlined_call_operand.vmem [shape: f32[32,6], index: 9, kind: output, shape index: {}]  }
   0x1 LB: > { %s784_s10 = sadd.s32 4294967295, %s817_s30   ;;  %p788_p0 = scmp.ge.s32.totalorder %s817_s30, 1  ;;  %s817_s30 = sphi %s869_s30, %s19_s30  }
   0x2   : > { %p287_p1 = scmp.lt.s32.totalorder %s817_s30, 5 }
   0x4   : > { %p288_p2 = pnand %p788_p0, %p287_p1 }
   0x5   : > { %p1119_p3 = scmp.lt.s32.totalorder (!%p288_p2), %s784_s10, 3 }
   0x6   : > { %291 = sbr.rel (%p288_p2) target bundleno = 608 (0x260), region = 56 }
   0xb   : > { %v386_v0 = vld [vmem:[%s1336_s1 + $0x178] sm:$0xff]  ;;  %v385_v2 = vld [vmem:[%s1336_s1 + $0x170] sm:$0xff]  ;;  %v384_v6 = vld [vmem:[%s1336_s1 + $0x168] sm:$0xff]  ;;  %s1347_s10 = smov (!%p1119_p3, %s784_s10), 3  ;;  %vm673_vm0 = vcmask 1043456   ;;  %vm640_vm1 = vcmask 261120  }
   0xc   : > { %v354_v1 = vld [vmem:[%s1336_s1 + $0x78] sm:$0xff]  ;;  %511 = vmatpush.msra.mxu2 %v386_v0  ;;  %v353_v4 = vld [vmem:[%s1336_s1 + $0x70] sm:$0xff]  ;;  %v352_v8 = vld [vmem:[%s1336_s1 + $0x68] sm:$0xff]  ;;  %s798_s18 = sshll.u32 %s1347_s10, 6  ;;  %vm669_vm2 = vcmask 31744   ;;  %s791_s13 = sshll.u32 %s1347_s10, 3 }
   0xd   : > { %471 = vmatpush.msra.mxu0 %v354_v1  ;;  %v402_v3 = vld [vmem:[%s1336_s1 + $0x1f8] sm:$0xff]  ;;  %v401_v7 = vld [vmem:[%s1336_s1 + $0x1f0] sm:$0xff]  ;;  %v400_v10 = vld [vmem:[%s1336_s1 + $0x1e8] sm:$0xff]  ;;  %s1205_s14 = scalar_lea.vmem %s1335_s0, %s798_s18  ;;  %s330_s20 = scalar_lea.vmem %s1344_s9, %s791_s13  ;;  %vm729_vm3 = vcmask 48128  }
   0xe   : > { %v370_v5 = vld [vmem:[%s1336_s1 + $0xf8] sm:$0xff]  ;;  %531 = vmatpush.msra.mxu3 %v402_v3  ;;  %512 = vmatpush.msra.mxu2 %v385_v2  ;;  %v369_v9 = vld [vmem:[%s1336_s1 + $0xf0] sm:$0xff]  ;;  %v383_v11 = vld [vmem:[%s1336_s1 + $0x160] sm:$0xff] }
   0xf   : > { %491 = vmatpush.msra.mxu1 %v370_v5  ;;  %472 = vmatpush.msra.mxu0 %v353_v4  ;;  %v351_v12 = vld [vmem:[%s1336_s1 + $0x60] sm:$0xff]  ;;  %v368_v13 = vld [vmem:[%s1336_s1 + $0xe8] sm:$0xff]  ;;  %v382_v16 = vld [vmem:[%s1336_s1 + $0x158] sm:$0xff] }
  0x10   : > { %532 = vmatpush.msra.mxu3 %v401_v7  ;;  %513 = vmatpush.msra.mxu2 %v384_v6  ;;  %v399_v14 = vld [vmem:[%s1336_s1 + $0x1e0] sm:$0xff]  ;;  %v350_v17 = vld [vmem:[%s1336_s1 + $0x58] sm:$0xff]  ;;  %v381_v20 = vld [vmem:[%s1336_s1 + $0x150] sm:$0xff] }
  0x11   : > { %492 = vmatpush.msra.mxu1 %v369_v9  ;;  %473 = vmatpush.msra.mxu0 %v352_v8  ;;  %v367_v15 = vld [vmem:[%s1336_s1 + $0xe0] sm:$0xff]  ;;  %v398_v18 = vld [vmem:[%s1336_s1 + $0x1d8] sm:$0xff]  ;;  %v349_v21 = vld [vmem:[%s1336_s1 + $0x50] sm:$0xff] }
  0x12   : > { %533 = vmatpush.msra.mxu3 %v400_v10  ;;  %514 = vmatpush.msra.mxu2 %v383_v11  ;;  %v366_v19 = vld [vmem:[%s1336_s1 + $0xd8] sm:$0xff]  ;;  %v397_v22 = vld [vmem:[%s1336_s1 + $0x1d0] sm:$0xff]  ;;  %v380_v24 = vld [vmem:[%s1336_s1 + $0x148] sm:$0xff] }
  0x13   : > { %493 = vmatpush.msra.mxu1 %v368_v13  ;;  %474 = vmatpush.msra.mxu0 %v351_v12  ;;  %v365_v23 = vld [vmem:[%s1336_s1 + $0xd0] sm:$0xff]  ;;  %v348_v25 = vld [vmem:[%s1336_s1 + $0x48] sm:$0xff]  ;;  %v379_v28 = vld [vmem:[%s1336_s1 + $0x140] sm:$0xff] }
  0x14   : > { %534 = vmatpush.msra.mxu3 %v399_v14  ;;  %515 = vmatpush.msra.mxu2 %v382_v16  ;;  %v396_v26 = vld [vmem:[%s1336_s1 + $0x1c8] sm:$0xff]  ;;  %v347_v29 = vld [vmem:[%s1336_s1 + $0x40] sm:$0xff]  ;;  %v378_v32 = vld [vmem:[%s1336_s1 + $0x138] sm:$0xff] }
  0x15   : > { %494 = vmatpush.msra.mxu1 %v367_v15  ;;  %475 = vmatpush.msra.mxu0 %v350_v17  ;;  %v364_v27 = vld [vmem:[%s1336_s1 + $0xc8] sm:$0xff]  ;;  %v395_v30 = vld [vmem:[%s1336_s1 + $0x1c0] sm:$0xff]  ;;  %v346_v33 = vld [vmem:[%s1336_s1 + $0x38] sm:$0xff] }
  0x16   : > { %535 = vmatpush.msra.mxu3 %v398_v18  ;;  %516 = vmatpush.msra.mxu2 %v381_v20  ;;  %v363_v31 = vld [vmem:[%s1336_s1 + $0xc0] sm:$0xff]  ;;  %v394_v34 = vld [vmem:[%s1336_s1 + $0x1b8] sm:$0xff]  ;;  %v377_v36 = vld [vmem:[%s1336_s1 + $0x130] sm:$0xff] }
  0x17   : > { %495 = vmatpush.msra.mxu1 %v366_v19  ;;  %476 = vmatpush.msra.mxu0 %v349_v21  ;;  %v362_v35 = vld [vmem:[%s1336_s1 + $0xb8] sm:$0xff]  ;;  %v345_v37 = vld [vmem:[%s1336_s1 + $0x30] sm:$0xff]  ;;  %v376_v40 = vld [vmem:[%s1336_s1 + $0x128] sm:$0xff] }
  0x18   : > { %536 = vmatpush.msra.mxu3 %v397_v22  ;;  %517 = vmatpush.msra.mxu2 %v380_v24  ;;  %v393_v38 = vld [vmem:[%s1336_s1 + $0x1b0] sm:$0xff]  ;;  %v344_v41 = vld [vmem:[%s1336_s1 + $0x28] sm:$0xff]  ;;  %v375_v44 = vld [vmem:[%s1336_s1 + $0x120] sm:$0xff] }
  0x19   : > { %496 = vmatpush.msra.mxu1 %v365_v23  ;;  %477 = vmatpush.msra.mxu0 %v348_v25  ;;  %v361_v39 = vld [vmem:[%s1336_s1 + $0xb0] sm:$0xff]  ;;  %v392_v42 = vld [vmem:[%s1336_s1 + $0x1a8] sm:$0xff]  ;;  %v343_v45 = vld [vmem:[%s1336_s1 + $0x20] sm:$0xff] }
  0x1a   : > { %537 = vmatpush.msra.mxu3 %v396_v26  ;;  %518 = vmatpush.msra.mxu2 %v379_v28  ;;  %v360_v43 = vld [vmem:[%s1336_s1 + $0xa8] sm:$0xff]  ;;  %v391_v46 = vld [vmem:[%s1336_s1 + $0x1a0] sm:$0xff]  ;;  %v374_v48 = vld [vmem:[%s1336_s1 + $0x118] sm:$0xff] }
  0x1b   : > { %497 = vmatpush.msra.mxu1 %v364_v27  ;;  %478 = vmatpush.msra.mxu0 %v347_v29  ;;  %v359_v47 = vld [vmem:[%s1336_s1 + $0xa0] sm:$0xff]  ;;  %v342_v49 = vld [vmem:[%s1336_s1 + $0x18] sm:$0xff]  ;;  %v373_v52 = vld [vmem:[%s1336_s1 + $0x110] sm:$0xff] }
  0x1c   : > { %538 = vmatpush.msra.mxu3 %v395_v30  ;;  %519 = vmatpush.msra.mxu2 %v378_v32  ;;  %v390_v50 = vld [vmem:[%s1336_s1 + $0x198] sm:$0xff]  ;;  %v341_v53 = vld [vmem:[%s1336_s1 + $0x10] sm:$0xff]  ;;  %v372_v56 = vld [vmem:[%s1336_s1 + $0x108] sm:$0xff] }
  0x1d   : > { %498 = vmatpush.msra.mxu1 %v363_v31  ;;  %479 = vmatpush.msra.mxu0 %v346_v33  ;;  %v358_v51 = vld [vmem:[%s1336_s1 + $0x98] sm:$0xff]  ;;  %v389_v54 = vld [vmem:[%s1336_s1 + $0x190] sm:$0xff]  ;;  %v340_v57 = vld [vmem:[%s1336_s1 + $0x8] sm:$0xff] }
  0x1e   : > { %539 = vmatpush.msra.mxu3 %v394_v34  ;;  %520 = vmatpush.msra.mxu2 %v377_v36  ;;  %v357_v55 = vld [vmem:[%s1336_s1 + $0x90] sm:$0xff]  ;;  %v388_v58 = vld [vmem:[%s1336_s1 + $0x188] sm:$0xff]  ;;  %v371_v60 = vld [vmem:[%s1336_s1 + $0x100] sm:$0xff] }
  0x1f   : > { %499 = vmatpush.msra.mxu1 %v362_v35  ;;  %480 = vmatpush.msra.mxu0 %v345_v37  ;;  %v356_v59 = vld [vmem:[%s1336_s1 + $0x88] sm:$0xff]  ;;  %v339_v61 = vld [vmem:[%s1336_s1] sm:$0xff]  ;;  %v450_v62 = vld [vmem:[%s1336_s1 + $0x378] sm:$0xff] }
  0x20   : > { %540 = vmatpush.msra.mxu3 %v393_v38  ;;  %521 = vmatpush.msra.mxu2 %v376_v40  ;;  %v387_v63 = vld [vmem:[%s1336_s1 + $0x180] sm:$0xff]  ;;  %v418_v0 = vld [vmem:[%s1336_s1 + $0x278] sm:$0xff]  ;;  %v449_v2 = vld [vmem:[%s1336_s1 + $0x370] sm:$0xff] }
  0x21   : > { %500 = vmatpush.msra.mxu1 %v361_v39  ;;  %481 = vmatpush.msra.mxu0 %v344_v41  ;;  %v466_v1 = vld [vmem:[%s1336_s1 + $0x3f8] sm:$0xff]  ;;  %v355_v3 = vld [vmem:[%s1336_s1 + $0x80] sm:$0xff]  ;;  %v417_v4 = vld [vmem:[%s1336_s1 + $0x270] sm:$0xff] }
  0x22   : > { %541 = vmatpush.msra.mxu3 %v392_v42  ;;  %522 = vmatpush.msra.mxu2 %v375_v44  ;;  %v434_v5 = vld [vmem:[%s1336_s1 + $0x2f8] sm:$0xff]  ;;  %v448_v6 = vld [vmem:[%s1336_s1 + $0x368] sm:$0xff]  ;;  %v465_v7 = vld [vmem:[%s1336_s1 + $0x3f0] sm:$0xff] }
  0x23   : > { %501 = vmatpush.msra.mxu1 %v360_v43  ;;  %482 = vmatpush.msra.mxu0 %v343_v45  ;;  %v416_v8 = vld [vmem:[%s1336_s1 + $0x268] sm:$0xff]  ;;  %v433_v9 = vld [vmem:[%s1336_s1 + $0x2f0] sm:$0xff]  ;;  %v447_v10 = vld [vmem:[%s1336_s1 + $0x360] sm:$0xff] }
  0x24   : > { %542 = vmatpush.msra.mxu3 %v391_v46  ;;  %523 = vmatpush.msra.mxu2 %v374_v48  ;;  %v464_v11 = vld [vmem:[%s1336_s1 + $0x3e8] sm:$0xff]  ;;  %v415_v12 = vld [vmem:[%s1336_s1 + $0x260] sm:$0xff]  ;;  %v446_v14 = vld [vmem:[%s1336_s1 + $0x358] sm:$0xff] }
  0x25   : > { %502 = vmatpush.msra.mxu1 %v359_v47  ;;  %483 = vmatpush.msra.mxu0 %v342_v49  ;;  %v432_v13 = vld [vmem:[%s1336_s1 + $0x2e8] sm:$0xff]  ;;  %v463_v15 = vld [vmem:[%s1336_s1 + $0x3e0] sm:$0xff]  ;;  %v414_v16 = vld [vmem:[%s1336_s1 + $0x258] sm:$0xff] }
  0x26   : > { %543 = vmatpush.msra.mxu3 %v390_v50  ;;  %524 = vmatpush.msra.mxu2 %v373_v52  ;;  %v431_v17 = vld [vmem:[%s1336_s1 + $0x2e0] sm:$0xff]  ;;  %v445_v18 = vld [vmem:[%s1336_s1 + $0x350] sm:$0xff]  ;;  %v462_v19 = vld [vmem:[%s1336_s1 + $0x3d8] sm:$0xff] }
  0x27   : > { %503 = vmatpush.msra.mxu1 %v358_v51  ;;  %484 = vmatpush.msra.mxu0 %v341_v53  ;;  %v413_v20 = vld [vmem:[%s1336_s1 + $0x250] sm:$0xff]  ;;  %v430_v21 = vld [vmem:[%s1336_s1 + $0x2d8] sm:$0xff]  ;;  %v444_v22 = vld [vmem:[%s1336_s1 + $0x348] sm:$0xff] }
  0x28   : > { %544 = vmatpush.msra.mxu3 %v389_v54  ;;  %525 = vmatpush.msra.mxu2 %v372_v56  ;;  %v461_v23 = vld [vmem:[%s1336_s1 + $0x3d0] sm:$0xff]  ;;  %v412_v24 = vld [vmem:[%s1336_s1 + $0x248] sm:$0xff]  ;;  %v443_v26 = vld [vmem:[%s1336_s1 + $0x340] sm:$0xff] }
  0x29   : > { %504 = vmatpush.msra.mxu1 %v357_v55  ;;  %485 = vmatpush.msra.mxu0 %v340_v57  ;;  %v429_v25 = vld [vmem:[%s1336_s1 + $0x2d0] sm:$0xff]  ;;  %v460_v27 = vld [vmem:[%s1336_s1 + $0x3c8] sm:$0xff]  ;;  %v411_v28 = vld [vmem:[%s1336_s1 + $0x240] sm:$0xff] }
  0x2a   : > { %545 = vmatpush.msra.mxu3 %v388_v58  ;;  %526 = vmatpush.msra.mxu2 %v371_v60  ;;  %v428_v29 = vld [vmem:[%s1336_s1 + $0x2c8] sm:$0xff]  ;;  %v442_v30 = vld [vmem:[%s1336_s1 + $0x338] sm:$0xff]  ;;  %v459_v31 = vld [vmem:[%s1336_s1 + $0x3c0] sm:$0xff] }
  0x2b   : > { %505 = vmatpush.msra.mxu1 %v356_v59  ;;  %486 = vmatpush.msra.mxu0 %v339_v61  ;;  %v410_v32 = vld [vmem:[%s1336_s1 + $0x238] sm:$0xff]  ;;  %v427_v33 = vld [vmem:[%s1336_s1 + $0x2c0] sm:$0xff]  ;;  %v441_v34 = vld [vmem:[%s1336_s1 + $0x330] sm:$0xff] }
  0x2c   : > { %591 = vmatpush.msrb.mxu2 %v450_v62  ;;  %546 = vmatpush.msra.mxu3 %v387_v63  ;;  %v458_v35 = vld [vmem:[%s1336_s1 + $0x3b8] sm:$0xff]  ;;  %v409_v36 = vld [vmem:[%s1336_s1 + $0x230] sm:$0xff]  ;;  %v440_v38 = vld [vmem:[%s1336_s1 + $0x328] sm:$0xff] }
  0x2d   : > { %551 = vmatpush.msrb.mxu0 %v418_v0  ;;  %506 = vmatpush.msra.mxu1 %v355_v3  ;;  %v426_v37 = vld [vmem:[%s1336_s1 + $0x2b8] sm:$0xff]  ;;  %v457_v39 = vld [vmem:[%s1336_s1 + $0x3b0] sm:$0xff]  ;;  %v408_v40 = vld [vmem:[%s1336_s1 + $0x228] sm:$0xff] }
  0x2e   : > { %611 = vmatpush.msrb.mxu3 %v466_v1  ;;  %592 = vmatpush.msrb.mxu2 %v449_v2  ;;  %v425_v41 = vld [vmem:[%s1336_s1 + $0x2b0] sm:$0xff]  ;;  %v439_v42 = vld [vmem:[%s1336_s1 + $0x320] sm:$0xff]  ;;  %v456_v43 = vld [vmem:[%s1336_s1 + $0x3a8] sm:$0xff] }
  0x2f   : > { %552 = vmatpush.msrb.mxu0 %v417_v4  ;;  %571 = vmatpush.msrb.mxu1 %v434_v5  ;;  %v333_v44 = vld [vmem:[%s1205_s14 + $0x10] sm:$0xff]  ;;  %v407_v45 = vld [vmem:[%s1336_s1 + $0x220] sm:$0xff]  ;;  %v424_v46 = vld [vmem:[%s1336_s1 + $0x2a8] sm:$0xff] }
  0x30   : > { %593 = vmatpush.msrb.mxu2 %v448_v6  ;;  %612 = vmatpush.msrb.mxu3 %v465_v7  ;;  %v438_v47 = vld [vmem:[%s1336_s1 + $0x318] sm:$0xff]  ;;  %v455_v48 = vld [vmem:[%s1336_s1 + $0x3a0] sm:$0xff]  ;;  %v437_v53 = vld [vmem:[%s1336_s1 + $0x310] sm:$0xff] }
  0x31   : > { %553 = vmatpush.msrb.mxu0 %v416_v8  ;;  %572 = vmatpush.msrb.mxu1 %v433_v9  ;;  %v331_v49 = vld [vmem:[%s1205_s14] sm:$0xff]  ;;  %v334_v50 = vld [vmem:[%s1205_s14 + $0x18] sm:$0xff]  ;;  %v332_v55 = vld [vmem:[%s1205_s14 + $0x8] sm:$0xff] }
  0x32   : > { %594 = vmatpush.msrb.mxu2 %v447_v10  ;;  %613 = vmatpush.msrb.mxu3 %v464_v11  ;;  %v406_v51 = vld [vmem:[%s1336_s1 + $0x218] sm:$0xff]  ;;  %v423_v52 = vld [vmem:[%s1336_s1 + $0x2a0] sm:$0xff]  ;;  %v405_v56 = vld [vmem:[%s1336_s1 + $0x210] sm:$0xff] }
  0x33   : > { %554 = vmatpush.msrb.mxu0 %v415_v12  ;;  %573 = vmatpush.msrb.mxu1 %v432_v13  ;;  %v454_v54 = vld [vmem:[%s1336_s1 + $0x398] sm:$0xff]  ;;  %v436_v58 = vld [vmem:[%s1336_s1 + $0x308] sm:$0xff]  ;;  %v453_v59 = vld [vmem:[%s1336_s1 + $0x390] sm:$0xff] }
  0x34   : > { %595 = vmatpush.msrb.mxu2 %v446_v14  ;;  %614 = vmatpush.msrb.mxu3 %v463_v15  ;;  %v422_v57 = vld [vmem:[%s1336_s1 + $0x298] sm:$0xff]  ;;  %v404_v60 = vld [vmem:[%s1336_s1 + $0x208] sm:$0xff]  ;;  %v421_v61 = vld [vmem:[%s1336_s1 + $0x290] sm:$0xff] }
  0x35   : > { %555 = vmatpush.msrb.mxu0 %v414_v16  ;;  %574 = vmatpush.msrb.mxu1 %v431_v17  ;;  %v435_v62 = vld [vmem:[%s1336_s1 + $0x300] sm:$0xff]  ;;  %v452_v63 = vld [vmem:[%s1336_s1 + $0x388] sm:$0xff]  ;;  %v337_v0 = vld [vmem:[%s1205_s14 + $0x30] sm:$0xff] }
  0x36   : > { %596 = vmatpush.msrb.mxu2 %v445_v18  ;;  %615 = vmatpush.msrb.mxu3 %v462_v19  ;;  %v403_v1 = vld [vmem:[%s1336_s1 + $0x200] sm:$0xff]  ;;  %v420_v2 = vld [vmem:[%s1336_s1 + $0x288] sm:$0xff]  ;;  %v338_v5 = vld [vmem:[%s1205_s14 + $0x38] sm:$0xff] }
  0x37   : > { %556 = vmatpush.msrb.mxu0 %v413_v20  ;;  %575 = vmatpush.msrb.mxu1 %v430_v21  ;;  %v451_v3 = vld [vmem:[%s1336_s1 + $0x380] sm:$0xff]  ;;  %v336_v7 = vld [vmem:[%s1205_s14 + $0x28] sm:$0xff]  ;;  %v635_v8 = vld [vmem:[%s1338_s3 + $0x18] sm:$0xff] }
  0x38   : > { %597 = vmatpush.msrb.mxu2 %v444_v22  ;;  %616 = vmatpush.msrb.mxu3 %v461_v23  ;;  %v335_v4 = vld [vmem:[%s1205_s14 + $0x20] sm:$0xff]  ;;  %v634_v9 = vld [vmem:[%s1338_s3 + $0x10] sm:$0xff]  ;;  %v633_v10 = vld [vmem:[%s1338_s3 + $0x8] sm:$0xff] }
  0x39   : > { %557 = vmatpush.msrb.mxu0 %v412_v24  ;;  %576 = vmatpush.msrb.mxu1 %v429_v25  ;;  %v419_v6 = vld [vmem:[%s1336_s1 + $0x280] sm:$0xff] }
  0x3a   : > { %598 = vmatpush.msrb.mxu2 %v443_v26  ;;  %617 = vmatpush.msrb.mxu3 %v460_v27  ;;  %v632_v11 = vld [vmem:[%s1338_s3] sm:$0xff] }
  0x3b   : > { %558 = vmatpush.msrb.mxu0 %v411_v28  ;;  %577 = vmatpush.msrb.mxu1 %v428_v29  ;;  %v664_v12 = vld [vmem:[%s1340_s5] sm:$0xf] }
  0x3c   : > { %599 = vmatpush.msrb.mxu2 %v442_v30  ;;  %618 = vmatpush.msrb.mxu3 %v459_v31  ;;  %v807_v13 = vld [vmem:[%s1337_s2] ss:$0 sm:$0xff]  ;;  %v701_v31 = vld [vmem:[%s1342_s7 + $0x18] sm:$0xff] }
  0x3d   : > { %559 = vmatpush.msrb.mxu0 %v410_v32  ;;  %578 = vmatpush.msrb.mxu1 %v427_v33  ;;  %v700_v32 = vld [vmem:[%s1342_s7 + $0x10] sm:$0xff]  ;;  %v808_v33 = vld [vmem:[%s1339_s4] ss:$0 sm:$0xff] }
  0x3e   : > { %600 = vmatpush.msrb.mxu2 %v441_v34  ;;  %619 = vmatpush.msrb.mxu3 %v458_v35 }
  0x3f   : > { %560 = vmatpush.msrb.mxu0 %v409_v36  ;;  %579 = vmatpush.msrb.mxu1 %v426_v37  ;;  %v699_v36 = vld [vmem:[%s1342_s7 + $0x8] sm:$0xff]  ;;  %v698_v37 = vld [vmem:[%s1342_s7] sm:$0xff] }
  0x40   : > { %601 = vmatpush.msrb.mxu2 %v440_v38  ;;  %620 = vmatpush.msrb.mxu3 %v457_v39  ;;  %v809_v38 = vld [vmem:[%s1341_s6] ss:$0 sm:$0xff] }
  0x41   : > { %561 = vmatpush.msrb.mxu0 %v408_v40  ;;  %580 = vmatpush.msrb.mxu1 %v425_v41 }
  0x42   : > { %602 = vmatpush.msrb.mxu2 %v439_v42  ;;  %621 = vmatpush.msrb.mxu3 %v456_v43  ;;  %v810_v42 = vld [vmem:[%s1343_s8] ss:$0 sm:$0xff] }
  0x43   : > { %527 = vmatmul.f32.vlgmr.msra.gmra.mxu2 %v333_v44  ;;  %562 = vmatpush.msrb.mxu0 %v407_v45 }
  0x44   : > { %581 = vmatpush.msrb.mxu1 %v424_v46  ;;  %603 = vmatpush.msrb.mxu2 %v438_v47 }
  0x45   : > { %622 = vmatpush.msrb.mxu3 %v455_v48  ;;  %487 = vmatmul.f32.vlgmr.msra.gmra.mxu0 %v331_v49 }
  0x46   : > { %547 = vmatmul.f32.vlgmr.msra.gmra.mxu3 %v334_v50  ;;  %563 = vmatpush.msrb.mxu0 %v406_v51 }
  0x47   : > { %582 = vmatpush.msrb.mxu1 %v423_v52  ;;  %604 = vmatpush.msrb.mxu2 %v437_v53 }
  0x48   : > { %623 = vmatpush.msrb.mxu3 %v454_v54  ;;  %507 = vmatmul.f32.vlgmr.msra.gmra.mxu1 %v332_v55 }
  0x49   : > { %564 = vmatpush.msrb.mxu0 %v405_v56  ;;  %583 = vmatpush.msrb.mxu1 %v422_v57 }
  0x4a   : > { %605 = vmatpush.msrb.mxu2 %v436_v58  ;;  %624 = vmatpush.msrb.mxu3 %v453_v59 }
  0x4b   : > { %565 = vmatpush.msrb.mxu0 %v404_v60  ;;  %584 = vmatpush.msrb.mxu1 %v421_v61 }
  0x4c   : > { %606 = vmatpush.msrb.mxu2 %v435_v62  ;;  %625 = vmatpush.msrb.mxu3 %v452_v63 }
  0x4d   : > { %607 = vmatmul.f32.vlgmr.msrb.gmra.mxu2 %v337_v0  ;;  %566 = vmatpush.msrb.mxu0 %v403_v1 }
  0x4e   : > { %585 = vmatpush.msrb.mxu1 %v420_v2  ;;  %626 = vmatpush.msrb.mxu3 %v451_v3 }
  0x4f   : > { %567 = vmatmul.f32.vlgmr.msrb.gmra.mxu0 %v335_v4  ;;  %627 = vmatmul.f32.vlgmr.msrb.gmra.mxu3 %v338_v5 }
  0x50   : > { %586 = vmatpush.msrb.mxu1 %v419_v6  ;;  %656 = vmatpush.msra.mxu0 %v635_v8 }
  0x51   : > { %587 = vmatmul.f32.vlgmr.msrb.gmra.mxu1 %v336_v7  ;;  %721 = vmatpush.msra.mxu2 %v701_v31 }
  0x52   : > { %657 = vmatpush.msra.mxu0 %v634_v9  ;;  %793 = vmatpush.msk.msra.mxu1 %vm673_vm0, %v664_v12 }
  0x53   : > { %722 = vmatpush.msra.mxu2 %v700_v32 }
  0x54   : > { %658 = vmatpush.msra.mxu0 %v633_v10 }
  0x55   : > { %723 = vmatpush.msra.mxu2 %v699_v36 }
  0x56   : > { %659 = vmatpush.msra.mxu0 %v632_v11 }
  0x57   : > { %724 = vmatpush.msra.mxu2 %v698_v37 }
  0xc2   : > { %v488_v14 = vpop.f32.mrf.mxu0 }
  0xc3   : > { %v489_v15 = vadd.f32 %v807_v13, %v488_v14 }
  0xc5   : > { %v508_v16 = vpop.f32.mrf.mxu1 }
  0xc6   : > { %v509_v17 = vadd.f32 %v508_v16, %v489_v15  ;;  %v528_v18 = vpop.f32.mrf.mxu2 }
  0xc8   : > { %v529_v19 = vadd.f32 %v528_v18, %v509_v17 }
  0xc9   : > { %v548_v20 = vpop.f32.mrf.mxu3 }
  0xca   : > { %v549_v21 = vadd.f32 %v548_v20, %v529_v19 }
  0xcc   : > { %v568_v22 = vpop.f32.mrf.mxu0 }
  0xcd   : > { %v569_v23 = vadd.f32 %v568_v22, %v549_v21 }
  0xce   : > { %v588_v24 = vpop.f32.mrf.mxu1 }
  0xcf   : > { %v589_v25 = vadd.f32 %v588_v24, %v569_v23 }
  0xd0   : > { %v608_v26 = vpop.f32.mrf.mxu2 }
  0xd1   : > { %v609_v27 = vadd.f32 %v608_v26, %v589_v25 }
  0xd2   : > { %v628_v28 = vpop.f32.mrf.mxu3 }
  0xd3   : > { %v629_v29 = vadd.f32 %v628_v28, %v609_v27 }
  0xd5   : > { %v631_v30 = vmax.f32 %v629_v29, 0.0 }
  0xd7   : > { %792 = vmatmul.msk.f32.vlgmr.msra.gmra.mxu0 %vm640_vm1, %v631_v30 }
 0x154   : > { %v661_v34 = vpop.f32.mrf.mxu0 }
 0x155   : > { %v662_v35 = vadd.f32 %v808_v33, %v661_v34 }
 0x157   : > { %794 = vmatmul.msk.f32.vlgmr.msra.gmra.mxu1 %vm669_vm2, %v662_v35 }
 0x1d4   : > { %v694_v39 = vpop.f32.mrf.mxu1 }
 0x1d5   : > { %v695_v40 = vadd.f32 %v809_v38, %v694_v39 }
 0x1d7   : > { %v697_v41 = vadd.f32 %v695_v40, %v631_v30 }
 0x1d9   : > { %795 = vmatmul.msk.f32.vlgmr.msra.gmra.mxu2 %vm640_vm1, %v697_v41 }
 0x25c   : > { %v726_v43 = vpop.f32.mrf.mxu2 }
 0x25d   : > { %v727_v44 = vadd.f32 %v810_v42, %v726_v43 }
 0x25f   : > { %730 = vst.msk [vmem:[%s330_s20] sm:$0xff] %vm729_vm3, %v727_v44 }
 0x260 PF: > { %s19_s30 = sadd.s32 1, %s817_s30  }
 0x261   : > { %p16_p4 = scmp.ge.s32.totalorder %s19_s30, 6  }
 0x263   :  { %18 = sbr.rel (!%p16_p4) target bundleno = 1 (0x1), region = 86 }

</bundles_post_ra>
